<compile_context>
chip_gen: v5e
topology: v5e:2x2
jax: 0.10.0
libtpu: 0.0.40
codegen_flags: <defaults>
</compile_context>

<pallas_src>
import jax
import jax.numpy as jnp
from jax.experimental import pallas as pl
from jax.experimental.pallas import tpu as pltpu


_LANE = 128
_SUBLANE = 8
_VMEM_LIMIT_BYTES = 32 * 1024 * 1024   # scoped VMEM limit (raises v5e's 16 MiB default)
_TILE_VMEM_BUDGET = 24 * 1024 * 1024   # budget for the double-buffered obs/out batch tiles
_DEFAULT_MAX_TILE_B = 8192


def _mlp_kernel(obs_ref, w1o_ref, b1_ref, w2_ref, b2_ref, out_ref):
    # obs_ref:  [tile_b, obs_dim]     f32 (native dtype, cast to bf16 here on the VPU)
    # w1o_ref:  [obs_dim, hidden]     bf16 (obs rows of torch W1.T)
    # b1_ref:   [1, hidden]           f32  (context term already folded in, in f32)
    # w2_ref:   [hidden, action_dim]  f32  (torch W2.T)
    # b2_ref:   [1, action_dim]       f32
    # out_ref:  [tile_b, action_dim]  f32
    obs = obs_ref[...].astype(w1o_ref.dtype)          # in-kernel cast, hides under obs DMA
    h = jnp.dot(obs, w1o_ref[...], preferred_element_type=jnp.float32)
    h = jnp.maximum(h + b1_ref[...], 0.0)             # bias-add + ReLU in f32
    # Second matmul kept fully in f32 (K = hidden is tiny -> MXU cost negligible).
    y = jnp.dot(h, w2_ref[...], preferred_element_type=jnp.float32)
    out_ref[...] = (y + b2_ref[...]).astype(out_ref.dtype)


def _round_up(x, m):
    return ((x + m - 1) // m) * m


def _padded_bytes(arr):
    """Approximate lane-padded VMEM footprint of a small 2-D resident block."""
    r, c = arr.shape
    return _round_up(r, _SUBLANE) * _round_up(c, _LANE) * arr.dtype.itemsize


def _choose_tile_b(B, obs_dim, action_dim, obs_itemsize, max_tile_b, weight_bytes):
    """Batch tile selection.

    - One full-batch block when B is too small to split into sublane-aligned tiles
      (full-dim blocks always satisfy the (8,128) rule).
    - Otherwise at least 2 (an even number of) grid steps so v7x's two TensorCores both
      get work along the "parallel" axis, with the tile capped by the lane-padded,
      double-buffered VMEM footprint of the obs/out blocks and tile_b = cdiv(B, n_steps)
      so the last step is never tiny.
    """
    if B < 2 * _SUBLANE:
        return B
    # Lane-padded bytes per batch row: double-buffered obs + double-buffered f32 out.
    per_row = 2 * (_round_up(obs_dim, _LANE) * obs_itemsize
                   + _round_up(action_dim, _LANE) * 4)
    budget = _TILE_VMEM_BUDGET - 2 * weight_bytes      # resident (double-buffered) weights
    vmem_cap = max(_SUBLANE, (budget // per_row) // _SUBLANE * _SUBLANE)
    cap = max(_SUBLANE, min(max_tile_b, vmem_cap))
    n_steps = max(2, pl.cdiv(B, cap))
    if n_steps % 2:
        n_steps += 1                                   # even step count -> clean megacore split
    tile_b = _round_up(pl.cdiv(B, n_steps), _SUBLANE)
    return min(tile_b, B)


def prepare_params(params, context, obs_dim, *, compute_dtype=jnp.bfloat16):
    """One-time prep; hoist out of the hot loop when params/context are reused.

    Folds the context contribution into an effective first-layer bias (in f32) and casts
    only the obs rows of W1 to the MXU compute dtype.
    """
    w1, b1, w2, b2 = params["w1"], params["b1"], params["w2"], params["b2"]
    ctx_term = jnp.dot(context.astype(jnp.float32), w1[obs_dim:].astype(jnp.float32),
                       preferred_element_type=jnp.float32)
    return {
        "w1_obs": w1[:obs_dim].astype(compute_dtype),
        "b1_eff": (b1.astype(jnp.float32) + ctx_term),
        "w2": w2.astype(jnp.float32),
        "b2": b2.astype(jnp.float32),
    }


def context_policy_apply(obs, prepped, *, max_tile_b=_DEFAULT_MAX_TILE_B):
    """obs: [B, obs_dim] (f32). Returns [B, action_dim] (f32)."""
    w1_obs, b1_eff = prepped["w1_obs"], prepped["b1_eff"]
    w2, b2 = prepped["w2"], prepped["b2"]
    B, obs_dim = obs.shape
    hidden_dim = w1_obs.shape[-1]
    action_dim = w2.shape[-1]

    weight_bytes = (_padded_bytes(w1_obs) + _padded_bytes(b1_eff)
                    + _padded_bytes(w2) + _padded_bytes(b2))
    tile_b = _choose_tile_b(B, obs_dim, action_dim, obs.dtype.itemsize,
                            max_tile_b, weight_bytes)
    grid = (pl.cdiv(B, tile_b),)

    grid_spec = pltpu.PrefetchScalarGridSpec(
        num_scalar_prefetch=0,
        grid=grid,
        in_specs=[
            pl.BlockSpec((tile_b, obs_dim), lambda i: (i, 0)),        # obs tiled on batch
            pl.BlockSpec((obs_dim, hidden_dim), lambda i: (0, 0)),    # weights VMEM-resident
            pl.BlockSpec((1, hidden_dim), lambda i: (0, 0)),
            pl.BlockSpec((hidden_dim, action_dim), lambda i: (0, 0)),
            pl.BlockSpec((1, action_dim), lambda i: (0, 0)),
        ],
        out_specs=pl.BlockSpec((tile_b, action_dim), lambda i: (i, 0)),
    )

    return pl.pallas_call(
        _mlp_kernel,
        out_shape=jax.ShapeDtypeStruct((B, action_dim), jnp.float32),
        grid_spec=grid_spec,
        compiler_params=pltpu.CompilerParams(
            dimension_semantics=("parallel",),        # megacore sharding of the batch on v7x
            vmem_limit_bytes=_VMEM_LIMIT_BYTES),
    )(obs, w1_obs, b1_eff, w2, b2)


def context_policy_forward(obs, context, params, *,
                           compute_dtype=jnp.bfloat16,
                           max_tile_b=_DEFAULT_MAX_TILE_B):
    """Convenience wrapper matching the torch module call signature."""
    prepped = prepare_params(params, context, obs.shape[-1], compute_dtype=compute_dtype)
    return context_policy_apply(obs, prepped, max_tile_b=max_tile_b)


def init_params(key, obs_dim, context_dim, hidden_dim, action_dim):
    """Deterministic synthetic init; weights stored as [in, out] (torch W.T)."""
    in_dim = obs_dim + context_dim
    k1, k2, k3, k4 = jax.random.split(key, 4)
    s1 = 1.0 / jnp.sqrt(in_dim)
    s2 = 1.0 / jnp.sqrt(hidden_dim)
    return {
        "w1": jax.random.uniform(k1, (in_dim, hidden_dim), jnp.float32, -s1, s1),
        "b1": jax.random.uniform(k2, (1, hidden_dim), jnp.float32, -s1, s1),
        "w2": jax.random.uniform(k3, (hidden_dim, action_dim), jnp.float32, -s2, s2),
        "b2": jax.random.uniform(k4, (1, action_dim), jnp.float32, -s2, s2),
    }


if __name__ == "__main__":
    obs_dim, context_dim, hidden_dim, action_dim = 16, 16, 32, 8
    batch = 8

    key = jax.random.PRNGKey(0)
    kp, ko, kc = jax.random.split(key, 3)

    params = init_params(kp, obs_dim, context_dim, hidden_dim, action_dim)
    obs = jax.random.normal(ko, (batch, obs_dim), jnp.float32)
    context = jax.random.normal(kc, (1, context_dim), jnp.float32)

    # Prep is hoisted once; a hot loop would reuse `prepped` across calls.
    prepped = prepare_params(params, context, obs_dim)
    out = jax.block_until_ready(context_policy_apply(obs, prepped))
    assert out.shape == (batch, action_dim)

    # Reference 1: mirror the kernel math (bf16 first matmul with f32 accumulation,
    # f32 second matmul, f32 context fold) -> tight-ish tolerance.
    bf16 = jnp.bfloat16
    b1_eff = params["b1"] + context @ params["w1"][obs_dim:]
    h = jnp.dot(obs.astype(bf16), params["w1"][:obs_dim].astype(bf16),
                preferred_element_type=jnp.float32) + b1_eff
    h = jnp.maximum(h, 0.0)
    ref_mirror = h @ params["w2"] + params["b2"]
    assert jnp.allclose(out, ref_mirror, atol=1e-2, rtol=1e-2)

    # Reference 2: original torch semantics (concat path) in pure f32 -> loose tolerance
    # covering only the bf16 rounding of the first matmul.
    x = jnp.concatenate(
        [obs, jnp.broadcast_to(context, (batch, context_dim))], axis=-1)
    ref_f32 = (jnp.maximum(x @ params["w1"] + params["b1"], 0.0)
               @ params["w2"] + params["b2"])
    assert jnp.allclose(out, ref_f32, atol=5e-2, rtol=5e-2)

    print("KERNEL_OK")
</pallas_src>

<mosaic_0001>
module attributes {stable_mosaic.version = 11 : i64} {
  func.func @_mlp_kernel(%arg0: i32, %arg1: memref<8x16xf32, #tpu.memory_space<vmem>>, %arg2: memref<16x32xbf16, #tpu.memory_space<vmem>>, %arg3: memref<1x32xf32, #tpu.memory_space<vmem>>, %arg4: memref<32x8xf32, #tpu.memory_space<vmem>>, %arg5: memref<1x8xf32, #tpu.memory_space<vmem>>, %arg6: memref<8x8xf32, #tpu.memory_space<vmem>>) attributes {dimension_semantics = [#tpu.dimension_semantics<parallel>], iteration_bounds = array<i64: 1>, scalar_prefetch = 0 : i64, scratch_operands = 0 : i64, tpu.core_type = #tpu.core_type<tc>, window_params = [{transform_indices = @transform_0, window_bounds = array<i64: 8, 16>}, {pipeline_mode = #tpu.pipeline_mode<synchronous>, transform_indices = @transform_1, window_bounds = array<i64: 16, 32>}, {pipeline_mode = #tpu.pipeline_mode<synchronous>, transform_indices = @transform_2, window_bounds = array<i64: 1, 32>}, {pipeline_mode = #tpu.pipeline_mode<synchronous>, transform_indices = @transform_3, window_bounds = array<i64: 32, 8>}, {pipeline_mode = #tpu.pipeline_mode<synchronous>, transform_indices = @transform_4, window_bounds = array<i64: 1, 8>}, {transform_indices = @transform_5, window_bounds = array<i64: 8, 8>}]} {
    %c0 = arith.constant 0 : index
    %c0_0 = arith.constant 0 : index
    %0 = vector.load %arg1[%c0, %c0_0] : memref<8x16xf32, #tpu.memory_space<vmem>>, vector<8x16xf32>
    %1 = arith.truncf %0 : vector<8x16xf32> to vector<8x16xbf16>
    %c0_1 = arith.constant 0 : index
    %c0_2 = arith.constant 0 : index
    %2 = vector.load %arg2[%c0_1, %c0_2] : memref<16x32xbf16, #tpu.memory_space<vmem>>, vector<16x32xbf16>
    %cst = arith.constant dense<0.000000e+00> : vector<8x32xf32>
    %3 = tpu.matmul %1, %2, %cst {dimension_numbers = #tpu.dot_dimension_numbers<[1], [0], [0], [1], [0, 0, 1, 1], [], []>} : vector<8x16xbf16>, vector<16x32xbf16>, vector<8x32xf32> -> vector<8x32xf32>
    %c0_3 = arith.constant 0 : index
    %c0_4 = arith.constant 0 : index
    %4 = vector.load %arg3[%c0_3, %c0_4] : memref<1x32xf32, #tpu.memory_space<vmem>>, vector<1x32xf32>
    %5 = vector.broadcast %4 : vector<1x32xf32> to vector<8x32xf32>
    %6 = arith.addf %3, %5 : vector<8x32xf32>
    %cst_5 = arith.constant 0.000000e+00 : f32
    %7 = vector.broadcast %cst_5 : f32 to vector<8x32xf32>
    %8 = arith.maximumf %6, %7 : vector<8x32xf32>
    %c0_6 = arith.constant 0 : index
    %c0_7 = arith.constant 0 : index
    %9 = vector.load %arg4[%c0_6, %c0_7] : memref<32x8xf32, #tpu.memory_space<vmem>>, vector<32x8xf32>
    %cst_8 = arith.constant dense<0.000000e+00> : vector<8x8xf32>
    %10 = tpu.matmul %8, %9, %cst_8 {dimension_numbers = #tpu.dot_dimension_numbers<[1], [0], [0], [1], [0, 0, 1, 1], [], []>} : vector<8x32xf32>, vector<32x8xf32>, vector<8x8xf32> -> vector<8x8xf32>
    %c0_9 = arith.constant 0 : index
    %c0_10 = arith.constant 0 : index
    %11 = vector.load %arg5[%c0_9, %c0_10] : memref<1x8xf32, #tpu.memory_space<vmem>>, vector<1x8xf32>
    %12 = vector.broadcast %11 : vector<1x8xf32> to vector<8x8xf32>
    %13 = arith.addf %10, %12 : vector<8x8xf32>
    %c0_11 = arith.constant 0 : index
    %c0_12 = arith.constant 0 : index
    %14 = vector.load %arg6[%c0_11, %c0_12] : memref<8x8xf32, #tpu.memory_space<vmem>>, vector<8x8xf32>
    tpu.vector_store %arg6[%c0_11, %c0_12], %13 {strides = array<i32>} : memref<8x8xf32, #tpu.memory_space<vmem>>, vector<8x8xf32>,
    return
  }
  func.func @transform_0(%arg0: i32) -> (i32, i32) {
    %c0_i32 = arith.constant 0 : i32
    %c0_i32_0 = arith.constant 0 : i32
    return %arg0, %c0_i32 : i32, i32
  }
  func.func @transform_1(%arg0: i32) -> (i32, i32) {
    %c0_i32 = arith.constant 0 : i32
    %c0_i32_0 = arith.constant 0 : i32
    %c0_i32_1 = arith.constant 0 : i32
    return %c0_i32, %c0_i32_0 : i32, i32
  }
  func.func @transform_2(%arg0: i32) -> (i32, i32) {
    %c0_i32 = arith.constant 0 : i32
    %c0_i32_0 = arith.constant 0 : i32
    %c0_i32_1 = arith.constant 0 : i32
    return %c0_i32, %c0_i32_0 : i32, i32
  }
  func.func @transform_3(%arg0: i32) -> (i32, i32) {
    %c0_i32 = arith.constant 0 : i32
    %c0_i32_0 = arith.constant 0 : i32
    %c0_i32_1 = arith.constant 0 : i32
    return %c0_i32, %c0_i32_0 : i32, i32
  }
  func.func @transform_4(%arg0: i32) -> (i32, i32) {
    %c0_i32 = arith.constant 0 : i32
    %c0_i32_0 = arith.constant 0 : i32
    %c0_i32_1 = arith.constant 0 : i32
    return %c0_i32, %c0_i32_0 : i32, i32
  }
  func.func @transform_5(%arg0: i32) -> (i32, i32) {
    %c0_i32 = arith.constant 0 : i32
    %c0_i32_0 = arith.constant 0 : i32
    return %arg0, %c0_i32 : i32, i32
  }
}

</mosaic_0001>

<bundles_post_ra>
// kernel: tpu_custom_call.1
= control target key start
LH: loop header
LB: loop body
LE: loop exit
PB: predicated region body
PF: predicated region fallthrough
CT: control target
= control target key end

     0   :  { %vm36_vm0 = vcmask 130048   ;;  %s198_s0 = inlined_call_operand.vmem [shape: f32[8,16], index: 0, kind: input, shape index: {}]   ;;  %s199_s1 = inlined_call_operand.vmem [shape: bf16[16,32], index: 1, kind: input, shape index: {}]   ;;  %s200_s2 = inlined_call_operand.vmem [shape: f32[1,32], index: 2, kind: input, shape index: {}]   ;;  %s201_s3 = inlined_call_operand.vmem [shape: f32[32,8], index: 3, kind: input, shape index: {}]   ;;  %s202_s4 = inlined_call_operand.vmem [shape: f32[1,8], index: 4, kind: input, shape index: {}]   ;;  %s203_s5 = inlined_call_operand.hbm [shape: f32[8,8], index: 5, kind: output, shape index: {}]  }
   0x1   :  { %v110_v0 = vld [vmem:[%s199_s1] sm:$0xff]  ;;  %v57_v2 = vld [vmem:[%s201_s3 + $0x18] sm:$0xff] }
   0x2   :  { %v22_v1 = vld [vmem:[%s198_s0] sm:$0xff]  ;;  %78 = vmatpush.msra.mxu1 %v57_v2  ;;  %47 = vmatpush.bf16.msra.mxu0 %v110_v0 }
   0x3   :  { %v23_v3 = vpack.c.bf16 %v22_v1, %v22_v1 }
   0x4   :  { %10 = vsyncpa [#allocation3], 0  ;;  %v56_v4 = vld [vmem:[%s201_s3 + $0x10] sm:$0xff]  ;;  %v55_v5 = vld [vmem:[%s201_s3 + $0x8] sm:$0xff]  ;;  %vm62_vm1 = vcmask 261120   ;;  %s140_s7 = smov [#allocation2]  }
   0x5   :  { %108 = vmatmul.msk.bf16.vlgmr.msra.gmra.mxu0 %vm36_vm0, %v23_v3  ;;  %79 = vmatpush.msra.mxu1 %v56_v4  ;;  %v54_v6 = vld [vmem:[%s201_s3] sm:$0xff]  ;;  %s93_s8 = sshll.u32 %s140_s7, 4  ;;  %s95_s3 = sshll.u32 %s203_s5, 4  ;;  %vm86_vm2 = vcmask 64512   ;;  %s94_s8 = int_to_ptr.vmem [resolvable:$true] %s93_s8  ;;  %s96_s3 = int_to_ptr.hbm [resolvable:$true] %s95_s3 }
   0x6   :  { %v112_v7 = vld [vmem:[%s200_s2] ss:$0 sm:$0xff] }
   0x7   :  { %80 = vmatpush.msra.mxu1 %v55_v5  ;;  %v113_v12 = vld [vmem:[%s202_s4] ss:$0 sm:$0xff] }
   0x9   :  { %81 = vmatpush.msra.mxu1 %v54_v6 }
  0x82   :  { %v49_v8 = vpop.f32.mrf.mxu0 }
  0x83   :  { %v50_v9 = vadd.f32 %v112_v7, %v49_v8 }
  0x85   :  { %v53_v10 = vmax.f32 %v50_v9, 0.0 }
  0x87   :  { %109 = vmatmul.msk.f32.vlgmr.msra.gmra.mxu1 %vm62_vm1, %v53_v10 }
  0x8a   :  { %v51_v11 = vpop.f32.mrf.mxu0 }
 0x104   :  { %v83_v13 = vpop.f32.mrf.mxu1 }
 0x105   :  { %v84_v14 = vadd.f32 %v113_v12, %v83_v13 }
 0x107   :  { %87 = vst.msk [vmem:[#allocation2] sm:$0xff] %vm86_vm2, %v84_v14 }
 0x108   :  { %98 = dma.vmem_to_hbm [thread:$0]  %s94_s8, 128, %s96_s3, [#allocation3]  }
 0x109   :  { %138 = dma.done.wait [#allocation3], 128  }
 0x10a   :  { %139 = vsyncadd [#allocation3], 4294967168 }
 0x10b   :  { %103 = vsyncpa [#allocation3], 1 }

</bundles_post_ra>
